<compile_context>
chip_gen: v7x
topology: tpu7x:2x2x1
jax: 0.10.0
libtpu: 0.0.40
codegen_flags: <defaults>
</compile_context>

<pallas_src>
import math
import functools

import jax
import jax.numpy as jnp
from jax.experimental import pallas as pl
from jax.experimental.pallas import tpu as pltpu


def _round_up(v, m):
    return (v + m - 1) // m * m


def _gat_segsum_kernel(blk_start_ref, nblk_ref, tgt_ref, g_ref, o_ref, *,
                       tile_n, f_out, eps):
    """One (node-tile i, edge-block k) step of the index-driven GAT aggregation.

    blk_start_ref : SMEM [n_tiles] i32   first edge-block index per node tile
    nblk_ref      : SMEM [n_tiles] i32   number of edge-blocks per node tile
    tgt_ref       : VMEM (1, tile_e) i32 sorted+padded edge target ids
    g_ref         : VMEM (tile_e, Fp) bf16  [relu(z)*a_exp | a_exp | 0-pad]
    o_ref         : VMEM (tile_n, Fp) f32   output tile, resident over k,
                                            doubles as the accumulator.
    """
    i = pl.program_id(0)
    k = pl.program_id(1)

    @pl.when(k == 0)
    def _init():
        o_ref[...] = jnp.zeros_like(o_ref)

    # Only edge blocks that actually contain edges targeting this node tile do
    # work; the remaining steps are skipped (their DMAs reuse the clamped
    # block, so nothing new is fetched).
    @pl.when(k < nblk_ref[i])
    def _accumulate():
        node_base = i * tile_n
        local = tgt_ref[...] - node_base                       # (1, tile_e) i32
        rows = jax.lax.broadcasted_iota(
            jnp.int32, (tile_n, local.shape[1]), 0)            # (tile_n, tile_e)
        onehot = (rows == local).astype(jnp.bfloat16)          # exact 0/1
        # bf16 x bf16 MXU matmul, f32 accumulation straight into the output.
        o_ref[...] += jnp.dot(onehot, g_ref[...],
                              preferred_element_type=jnp.float32)

    @pl.when(k == pl.num_programs(1) - 1)
    def _finalize():
        acc = o_ref[...]
        a_sum = acc[:, f_out:f_out + 1] + eps                  # softmax normalizer
        o_ref[...] = acc / a_sum                               # exact divide (once/tile)


def graph_convolution_forward(x, src, tgt, Mtgt, Wf, bf, Ww, bw, *,
                              eps=1e-6, tile_n=512, tile_e=1024):
    """Pallas-backed GAT layer forward.

    x: [N, F_in], src/tgt: [E] int32, Mtgt: [N, E] (implied by tgt),
    Wf: [2*F_in, F_out], bf: [F_out], Ww: [2*F_in, 1], bw: [1].
    Returns [N, F_out] float32.
    """
    N, F_in = x.shape
    E = int(src.shape[0])
    F_out = int(Wf.shape[1])

    x = x.astype(jnp.float32)
    Wf = Wf.astype(jnp.float32)
    Ww = Ww.astype(jnp.float32)
    # Mtgt[n, e] == (tgt[e] == n): the kernel uses tgt directly (segment-sum),
    # so the dense incidence matrix is never materialized / streamed.
    del Mtgt

    # ---- fused node-granularity linears (f and w share one weight) ---------
    W_full = jnp.concatenate([Wf, Ww], axis=1)                    # [2F_in, F_out+1]
    b_full = jnp.concatenate(
        [bf.reshape(-1), bw.reshape(-1)]).astype(jnp.float32)     # [F_out+1]
    P = x @ W_full[:F_in]                                         # [N, F_out+1]
    Q = x @ W_full[F_in:]                                         # [N, F_out+1]
    z = P[src] + Q[tgt] + b_full[None, :]                         # [E, F_out+1]

    # ---- per-edge activations, computed ONCE (not once per node tile) ------
    # NOTE: requires E >= 1 (with E == 0 the max is -inf, same as the module).
    logit = z[:, F_out]
    a_base = jnp.max(logit)                                       # global softmax max
    a_exp = jnp.exp(logit - a_base)[:, None]                      # [E, 1]
    y = jnp.maximum(z[:, :F_out], 0.0)                            # relu
    g = jnp.concatenate([y * a_exp, a_exp], axis=1)               # [E, F_out+1]

    # ---- sort edges by target: each node tile owns a contiguous edge range --
    order = jnp.argsort(tgt)
    tgt_s = tgt[order].astype(jnp.int32)
    g_s = g[order].astype(jnp.bfloat16)     # bf16 edge stream, f32 accumulation

    # ---- pad to TPU-friendly (lane-dense / tileable) shapes -----------------
    Fp = _round_up(F_out + 1, 128)
    tile_n = max(8, min(tile_n, _round_up(N, 8)))
    tile_e = max(128, min(tile_e, _round_up(E, 128)))
    N_pad = _round_up(N, tile_n)
    E_pad = _round_up(E, tile_e)
    n_tiles = N_pad // tile_n
    e_blocks = E_pad // tile_e

    g_p = jnp.zeros((E_pad, Fp), jnp.bfloat16).at[:E, :F_out + 1].set(g_s)
    # Pad targets with N_pad: keeps the array sorted and outside every node
    # tile window (padded g rows are all-zero anyway, so doubly harmless).
    tgt_p = jnp.full((1, E_pad), N_pad, jnp.int32).at[0, :E].set(tgt_s)

    # ---- per-node-tile edge-block ranges (scalar prefetch -> SMEM) ----------
    tile_lo = jnp.arange(n_tiles, dtype=jnp.int32) * tile_n
    row_start = jnp.searchsorted(tgt_p[0], tile_lo, side="left")
    row_end = jnp.searchsorted(tgt_p[0], tile_lo + tile_n, side="left")
    blk_end = (row_end + tile_e - 1) // tile_e
    blk_start = row_start // tile_e
    nblk = jnp.maximum(blk_end - blk_start, 0).astype(jnp.int32)
    blk_start = jnp.minimum(blk_start, e_blocks - 1).astype(jnp.int32)

    def edge_block(i, k, blk_start_ref, nblk_ref):
        # Clamp so inactive steps re-use the previous block (DMA elided) and
        # indices always stay in range.
        kk = jnp.minimum(k, jnp.maximum(nblk_ref[i] - 1, 0))
        return jnp.minimum(blk_start_ref[i] + kk, e_blocks - 1)

    kernel = functools.partial(_gat_segsum_kernel, tile_n=tile_n,
                               f_out=F_out, eps=eps)

    out_p = pl.pallas_call(
        kernel,
        out_shape=jax.ShapeDtypeStruct((N_pad, Fp), jnp.float32),
        grid_spec=pltpu.PrefetchScalarGridSpec(
            num_scalar_prefetch=2,
            grid=(n_tiles, e_blocks),
            in_specs=[
                # sorted target ids for the current edge block
                pl.BlockSpec((1, tile_e),
                             lambda i, k, bs, nb: (0, edge_block(i, k, bs, nb))),
                # fused bf16 edge features for the current edge block
                pl.BlockSpec((tile_e, Fp),
                             lambda i, k, bs, nb: (edge_block(i, k, bs, nb), 0)),
            ],
            out_specs=pl.BlockSpec((tile_n, Fp), lambda i, k, bs, nb: (i, 0)),
        ),
        compiler_params=pltpu.CompilerParams(
            dimension_semantics=("parallel", "arbitrary")),
    )(blk_start, nblk, tgt_p, g_p)

    return out_p[:N, :F_out]


def _reference_forward(x, src, tgt, Mtgt, Wf, bf, Ww, bw, eps=1e-6):
    hsrc = x[src]
    htgt = x[tgt]
    h = jnp.concatenate([hsrc, htgt], axis=1)
    y = jax.nn.relu(h @ Wf + bf[None, :])
    a = h @ Ww + bw[None, :]
    a_base = jnp.max(a, axis=0, keepdims=True)
    a_exp = jnp.exp(a - a_base)
    a_sum = Mtgt @ a_exp + eps
    return (Mtgt @ (y * a_exp)) / a_sum


def _xavier_uniform(key, shape):
    # shape is (fan_out, fan_in) in torch convention
    fan_out, fan_in = shape
    bound = math.sqrt(6.0 / (fan_in + fan_out))
    return jax.random.uniform(key, shape, minval=-bound, maxval=bound,
                              dtype=jnp.float32)


if __name__ == "__main__":
    key = jax.random.PRNGKey(0)
    k_x, k_src, k_tgt, k_wf, k_bf, k_ww, k_bw = jax.random.split(key, 7)

    N = 32            # number of nodes
    E = 320           # number of edges
    F_in = 8          # in_features
    F_out = 32        # out_features
    eps = 1e-6

    # deterministic inputs
    x = jax.random.normal(k_x, (N, F_in), dtype=jnp.float32)
    src = jax.random.randint(k_src, (E,), 0, N, dtype=jnp.int32)
    tgt = jax.random.randint(k_tgt, (E,), 0, N, dtype=jnp.int32)
    # dense Mtgt (only used by the reference): Mtgt[n, e] = 1 if tgt[e] == n
    Mtgt = (tgt[None, :] == jnp.arange(N)[:, None]).astype(jnp.float32)

    # parameters (torch: f = Linear(2*F_in, F_out), w = Linear(2*F_in, 1))
    Wf_t = _xavier_uniform(k_wf, (F_out, 2 * F_in))               # torch layout
    Ww_t = _xavier_uniform(k_ww, (1, 2 * F_in))
    b_bound = 1.0 / math.sqrt(2 * F_in)
    bf = jax.random.uniform(k_bf, (F_out,), minval=-b_bound, maxval=b_bound,
                            dtype=jnp.float32)
    bw = jax.random.uniform(k_bw, (1,), minval=-b_bound, maxval=b_bound,
                            dtype=jnp.float32)
    Wf = Wf_t.T                                                   # [2*F_in, F_out]
    Ww = Ww_t.T                                                   # [2*F_in, 1]

    # small tiles -> a real (2 node-tiles x 3 edge-blocks) grid at demo shapes,
    # exercising the scalar-prefetch block skipping.
    out = graph_convolution_forward(x, src, tgt, Mtgt, Wf, bf, Ww, bw,
                                    eps=eps, tile_n=16, tile_e=128)
    out = jax.block_until_ready(out)

    ref = _reference_forward(x, src, tgt, Mtgt, Wf, bf, Ww, bw, eps=eps)
    assert out.shape == (N, F_out)
    max_err = jnp.max(jnp.abs(out - ref))
    # bf16 edge-feature stream (perf review item) -> ~0.2-0.4% relative rounding
    # on the aggregated features; the softmax normalization itself is exact f32.
    assert jnp.allclose(out, ref, atol=5e-3, rtol=5e-3), (
        f"mismatch vs reference (max abs err {max_err})")

    print("KERNEL_OK")
</pallas_src>

<mosaic_0001>
module attributes {stable_mosaic.version = 11 : i64} {
  func.func @_gat_segsum_kernel(%arg0: i32, %arg1: i32, %arg2: memref<2xi32, #tpu.memory_space<smem>>, %arg3: memref<2xi32, #tpu.memory_space<smem>>, %arg4: memref<1x128xi32, #tpu.memory_space<vmem>>, %arg5: memref<128x128xbf16, #tpu.memory_space<vmem>>, %arg6: memref<16x128xf32, #tpu.memory_space<vmem>>) attributes {dimension_semantics = [#tpu.dimension_semantics<parallel>, #tpu.dimension_semantics<arbitrary>], iteration_bounds = array<i64: 2, 3>, scalar_prefetch = 2 : i64, scratch_operands = 0 : i64, tpu.core_type = #tpu.core_type<tc>, window_params = [{transform_indices = @transform_0, window_bounds = array<i64: 1, 128>}, {transform_indices = @transform_1, window_bounds = array<i64: 128, 128>}, {transform_indices = @transform_2, window_bounds = array<i64: 16, 128>}]} {
    %c0_i32 = arith.constant 0 : i32
    %0 = arith.cmpi eq, %arg1, %c0_i32 : i32
    %1 = arith.extui %0 : i1 to i32
    %c0_i32_0 = arith.constant 0 : i32
    %2 = arith.cmpi ne, %1, %c0_i32_0 : i32
    scf.if %2 {
      %cst = arith.constant 0.000000e+00 : f32
      %11 = vector.broadcast %cst : f32 to vector<16x128xf32>
      %c0 = arith.constant 0 : index
      %c0_3 = arith.constant 0 : index
      %12 = vector.load %arg6[%c0, %c0_3] : memref<16x128xf32, #tpu.memory_space<vmem>>, vector<16x128xf32>
      tpu.vector_store %arg6[%c0, %c0_3], %11 {strides = array<i32>} : memref<16x128xf32, #tpu.memory_space<vmem>>, vector<16x128xf32>,
    } else {
    }
    %3 = arith.index_cast %arg0 : i32 to index
    %4 = memref.load %arg3[%3] : memref<2xi32, #tpu.memory_space<smem>>
    %5 = arith.cmpi slt, %arg1, %4 : i32
    %6 = arith.extui %5 : i1 to i32
    %c0_i32_1 = arith.constant 0 : i32
    %7 = arith.cmpi ne, %6, %c0_i32_1 : i32
    scf.if %7 {
      %c16_i32 = arith.constant 16 : i32
      %11 = arith.muli %arg0, %c16_i32 : i32
      %c0 = arith.constant 0 : index
      %c0_3 = arith.constant 0 : index
      %12 = vector.load %arg4[%c0, %c0_3] : memref<1x128xi32, #tpu.memory_space<vmem>>, vector<1x128xi32>
      %13 = vector.broadcast %11 : i32 to vector<1x128xi32>
      %14 = arith.subi %12, %13 : vector<1x128xi32>
      %15 = tpu.iota {dimensions = array<i32: 0>} : vector<16x128xi32>
      %16 = vector.broadcast %14 : vector<1x128xi32> to vector<16x128xi32>
      %17 = arith.cmpi eq, %15, %16 : vector<16x128xi32>
      %18 = arith.extui %17 : vector<16x128xi1> to vector<16x128xi32>
      %19 = arith.sitofp %18 : vector<16x128xi32> to vector<16x128xf32>
      %20 = arith.truncf %19 : vector<16x128xf32> to vector<16x128xbf16>
      %c0_4 = arith.constant 0 : index
      %c0_5 = arith.constant 0 : index
      %21 = vector.load %arg6[%c0_4, %c0_5] : memref<16x128xf32, #tpu.memory_space<vmem>>, vector<16x128xf32>
      %c0_6 = arith.constant 0 : index
      %c0_7 = arith.constant 0 : index
      %22 = vector.load %arg5[%c0_6, %c0_7] : memref<128x128xbf16, #tpu.memory_space<vmem>>, vector<128x128xbf16>
      %cst = arith.constant dense<0.000000e+00> : vector<16x128xf32>
      %23 = tpu.matmul %20, %22, %cst {dimension_numbers = #tpu.dot_dimension_numbers<[1], [0], [0], [1], [0, 0, 1, 1], [], []>} : vector<16x128xbf16>, vector<128x128xbf16>, vector<16x128xf32> -> vector<16x128xf32>
      %24 = arith.addf %21, %23 : vector<16x128xf32>
      %c0_8 = arith.constant 0 : index
      %c0_9 = arith.constant 0 : index
      %25 = vector.load %arg6[%c0_8, %c0_9] : memref<16x128xf32, #tpu.memory_space<vmem>>, vector<16x128xf32>
      tpu.vector_store %arg6[%c0_8, %c0_9], %24 {strides = array<i32>} : memref<16x128xf32, #tpu.memory_space<vmem>>, vector<16x128xf32>,
    } else {
    }
    %c2_i32 = arith.constant 2 : i32
    %8 = arith.cmpi eq, %arg1, %c2_i32 : i32
    %9 = arith.extui %8 : i1 to i32
    %c0_i32_2 = arith.constant 0 : i32
    %10 = arith.cmpi ne, %9, %c0_i32_2 : i32
    scf.if %10 {
      %c0 = arith.constant 0 : index
      %c0_3 = arith.constant 0 : index
      %11 = vector.load %arg6[%c0, %c0_3] : memref<16x128xf32, #tpu.memory_space<vmem>>, vector<16x128xf32>
      %12 = vector.extract_strided_slice %11 {offsets = [0, 32], sizes = [16, 1], strides = [1, 1]} : vector<16x128xf32> to vector<16x1xf32>
      %cst = arith.constant 9.99999997E-7 : f32
      %13 = vector.broadcast %cst : f32 to vector<16x1xf32>
      %14 = arith.addf %12, %13 : vector<16x1xf32>
      %15 = vector.broadcast %14 : vector<16x1xf32> to vector<16x128xf32>
      %16 = arith.divf %11, %15 : vector<16x128xf32>
      %c0_4 = arith.constant 0 : index
      %c0_5 = arith.constant 0 : index
      %17 = vector.load %arg6[%c0_4, %c0_5] : memref<16x128xf32, #tpu.memory_space<vmem>>, vector<16x128xf32>
      tpu.vector_store %arg6[%c0_4, %c0_5], %16 {strides = array<i32>} : memref<16x128xf32, #tpu.memory_space<vmem>>, vector<16x128xf32>,
    } else {
    }
    return
  }
  func.func @transform_0(%arg0: i32, %arg1: i32, %arg2: memref<2xi32, #tpu.memory_space<smem>>, %arg3: memref<2xi32, #tpu.memory_space<smem>>) -> (i32, i32) {
    %0 = arith.index_cast %arg0 : i32 to index
    %1 = memref.load %arg3[%0] : memref<2xi32, #tpu.memory_space<smem>>
    %c1_i32 = arith.constant 1 : i32
    %2 = arith.subi %1, %c1_i32 : i32
    %c0_i32 = arith.constant 0 : i32
    %3 = arith.maxsi %2, %c0_i32 : i32
    %4 = arith.minsi %arg1, %3 : i32
    %5 = arith.index_cast %arg0 : i32 to index
    %6 = memref.load %arg2[%5] : memref<2xi32, #tpu.memory_space<smem>>
    %7 = arith.addi %6, %4 : i32
    %c2_i32 = arith.constant 2 : i32
    %8 = arith.minsi %7, %c2_i32 : i32
    %c0_i32_0 = arith.constant 0 : i32
    %c0_i32_1 = arith.constant 0 : i32
    return %c0_i32_0, %8 : i32, i32
  }
  func.func @transform_1(%arg0: i32, %arg1: i32, %arg2: memref<2xi32, #tpu.memory_space<smem>>, %arg3: memref<2xi32, #tpu.memory_space<smem>>) -> (i32, i32) {
    %0 = arith.index_cast %arg0 : i32 to index
    %1 = memref.load %arg3[%0] : memref<2xi32, #tpu.memory_space<smem>>
    %c1_i32 = arith.constant 1 : i32
    %2 = arith.subi %1, %c1_i32 : i32
    %c0_i32 = arith.constant 0 : i32
    %3 = arith.maxsi %2, %c0_i32 : i32
    %4 = arith.minsi %arg1, %3 : i32
    %5 = arith.index_cast %arg0 : i32 to index
    %6 = memref.load %arg2[%5] : memref<2xi32, #tpu.memory_space<smem>>
    %7 = arith.addi %6, %4 : i32
    %c2_i32 = arith.constant 2 : i32
    %8 = arith.minsi %7, %c2_i32 : i32
    %c0_i32_0 = arith.constant 0 : i32
    %c0_i32_1 = arith.constant 0 : i32
    return %8, %c0_i32_0 : i32, i32
  }
  func.func @transform_2(%arg0: i32, %arg1: i32, %arg2: memref<2xi32, #tpu.memory_space<smem>>, %arg3: memref<2xi32, #tpu.memory_space<smem>>) -> (i32, i32) {
    %c0_i32 = arith.constant 0 : i32
    %c0_i32_0 = arith.constant 0 : i32
    return %arg0, %c0_i32 : i32, i32
  }
}

</mosaic_0001>

<bundles_post_ra>
// kernel: tpu_custom_call.1
= control target key start
LH: loop header
LB: loop body
LE: loop exit
PB: predicated region body
PF: predicated region fallthrough
CT: control target
= control target key end

     0   :  { %s1317_s0 = inlined_call_operand.hbm [shape: s32[2], index: 0, kind: input, shape index: {}]   ;;  %s1318_s2 = inlined_call_operand.vmem [shape: s32[1,384], index: 2, kind: input, shape index: {}]   ;;  %s1319_s3 = inlined_call_operand.hbm [shape: bf16[384,128], index: 3, kind: input, shape index: {}]   ;;  %s1320_s4 = inlined_call_operand.hbm [shape: f32[32,128], index: 4, kind: output, shape index: {}]   ;;  %s1321_s1 = inlined_call_operand.vmem [shape: s32[2], index: 1, kind: input, shape index: {}]  }
   0x1   :  { %s787_s17 = scalar_lea.hbm %s1317_s0, 16 }
   0x2   :  { %p788_p0 = scmp.ne.s32.totalorder %s1317_s0, %s787_s17  ;;  %p791_p1 = scmp.lt.u32.totalorder %s787_s17, %s1317_s0 }
   0x4   :  { %p793_p2 = pnand %p791_p1, %p788_p0 }
   0x6   :  { %796 = shalt.err (!%p793_p2)  }
   0x7   :  { %s965_s22 = smov [#allocation3]   ;;  %s11_s27 = sshll.u32 %s1321_s1, 4  ;;  %s12_s27 = int_to_ptr.vmem [resolvable:$true] %s11_s27 }
   0x8   :  { %10 = dma.hbm_to_smem %s1317_s0, 16, %s965_s22, [#allocation2] }
   0x9   :  { %s797_s28 = scalar_lea.vmem %s12_s27, 16  ;;  %p802_p4 = scmp.lt.s32.totalorder %s12_s27, %s12_s27 }
   0xa   :  { %p798_p3 = scmp.ne.s32.totalorder %s12_s27, %s797_s28  ;;  %p803_p5 = scmp.lt.s32.totalorder %s797_s28, %s797_s28 }
   0xc   :  { %p804_p6 = por %p803_p5, %p802_p4 }
   0xe   :  { %p805_p7 = pnand %p804_p6, %p798_p3 }
  0x10   :  { %808 = shalt.err (!%p805_p7)  }
  0x11   :  { %s966_s29 = smov [#allocation4]  }
  0x12   :  { %14 = dma.vmem_to_smem %s12_s27, 16, %s966_s29, [#allocation2] }
  0x13   :  { %911 = dma.done.wait [#allocation2], 32 }
  0x14   :  { %912 = vsyncadd [#allocation2], 4294967264 }
  0x15   :  { %16 = sfence }
  0x16   :  { %17 = vsyncpa [#allocation6], 0 }
  0x17   :  { %19 = vsyncpa [#allocation6 + $0x1], 0 }
  0x18   :  { %20 = vsyncpa [#allocation7], 0 }
  0x19   :  { %22 = vsyncpa [#allocation7 + $0x1], 0  ;;  %s1018_s0 = smov 0   ;;  %s1020_s1 = smov 0  }
  0x1a   :  { %s1022_s30 = smov 0   ;;  %s1024_s5 = smov 0  }
  0x1b   :  { %s1026_s6 = smov 0   ;;  %s1028_s7 = smov 0  }
  0x1c   :  { %s1030_s8 = smov 0   ;;  %s1032_s9 = smov 0  }
  0x1d   :  { %s1034_s10 = smov 0   ;;  %s1036_s11 = smov 0  }
  0x1e   :  { %s1038_s12 = smov 0  }
  0x1f LB: > { %1328 = sst [smem:[#allocation16_spill]] %s943_s7  ;;  %s37_s13 = sadd.s32 1, %s955_s10  ;;  %s963_s12 = sphi %s1038_s12, %s28_s12   ;;  %s959_s11 = sphi %s1036_s11, %s1355_s11   ;;  %s955_s10 = sphi %s1034_s10, %s1354_s10   ;;  %s951_s9 = sphi %s1032_s9, %s1345_s9   ;;  %s947_s8 = sphi %s1030_s8, %s1353_s8   ;;  %s943_s7 = sphi %s1028_s7, %s1344_s7   ;;  %s939_s6 = sphi %s1026_s6, %s1352_s6   ;;  %s935_s5 = sphi %s1024_s5, %s1351_s5   ;;  %s931_s30 = sphi %s1022_s30, %s1350_s30   ;;  %s927_s1 = sphi %s1020_s1, %s1349_s1   ;;  %s923_s0 = sphi %s1018_s0, %s1348_s0  }
  0x20   : > { %1329 = sst [smem:[#allocation17_spill]] %s959_s11  ;;  %s40_s14 = sadd.s32 1, %s959_s11 }
  0x21   : > { %p38_p8 = scmp.ge.s32.totalorder %s37_s13, 3  ;;  %s90_s15 = sld [smem:[#allocation4 + %s959_s11]] }
  0x22   : > { %s582_s16 = sadd.s32 4294967295, %s963_s12   ;;  %s583_s17 = sadd.s32 4294967294, %s963_s12  }
  0x23   : > { %s1357_s13 = smov (%p38_p8, %s37_s13), 0  ;;  %s1359_s14 = smov (!%p38_p8, %s40_s14), %s959_s11 }
  0x24   : > { %1330 = sst [smem:[#allocation18_spill]] %s1357_s13  ;;  %p120_p9 = scmp.ne.s32.totalorder %s943_s7, %s939_s6 }
  0x25   : > { %s96_s18 = sld [smem:[#allocation3 + %s959_s11]]  ;;  %p42_p10 = scmp.ge.s32.totalorder %s1359_s14, 2 }
  0x26   : > { %p121_p11 = scmp.eq.s32.totalorder %s963_s12, 0  ;;  %p126_p12 = scmp.ne.s32.totalorder %s939_s6, %s935_s5 }
  0x27   : > { %s586_s19 = sadd.s32 4294967295, %s90_s15  ;;  %s1361_s14 = smov (%p42_p10, %s1359_s14), 0 }
  0x28   : > { %1331 = sst [smem:[#allocation19_spill]] %s1361_s14  ;;  %p92_p13 = scmp.gt.s32.totalorder %s586_s19, 0 }
  0x29   : > { %p127_p0 = scmp.eq.s32.totalorder %s582_s16, 0  ;;  %s100_s20 = sld [smem:[#allocation4 + %s1361_s14]] }
  0x2a   : > { %s106_s21 = sld [smem:[#allocation3 + %s1361_s14]]  ;;  %s1363_s19 = smov (!%p92_p13, %s586_s19), 0 }
  0x2b   : > { %p1088_p1 = por %p127_p0, %p126_p12  ;;  %s136_s23 = ssub.s32 %s959_s11, %s1361_s14 }
  0x2c   : > { %p94_p2 = scmp.lt.s32.totalorder %s955_s10, %s1363_s19  ;;  %p1095_p3 = scmp.eq.s32.totalorder %s136_s23, 0 }
  0x2d   : > { %s1332_s22 = scalar_select %p1088_p1, 1, 0 }
  0x2e   : > { %s139_s25 = sadd.s32 1, %s931_s30  ;;  %p149_p4 = scmp.ne.s32.totalorder %s931_s30, %s927_s1 }
  0x2f   : > { %s95_s26 = scalar_select %p94_p2, %s955_s10, %s1363_s19 }
  0x30   : > { %s587_s27 = sadd.s32 4294967295, %s100_s20  ;;  %p150_p5 = scmp.eq.s32.totalorder %s582_s16, 5 }
  0x31   : > { %s97_s28 = sadd.s32 %s96_s18, %s95_s26  ;;  %p102_p6 = scmp.gt.s32.totalorder %s587_s27, 0 }
  0x32   : > { %p98_p7 = scmp.lt.s32.totalorder %s97_s28, 2  ;;  %p1103_p8 = por %p150_p5, %p149_p4 }
  0x33   : > { %s1365_s27 = smov (!%p102_p6, %s587_s27), 0  ;;  %p155_p12 = scmp.ne.s32.totalorder %s927_s1, %s923_s0 }
  0x34   : > { %s1334_s29 = scalar_select %p1103_p8, 1, 0 }
  0x35   : > { %s1367_s28 = smov (!%p98_p7, %s97_s28), 2  ;;  %p104_p10 = scmp.lt.s32.totalorder %s1357_s13, %s1365_s27 }
  0x36   : > { %s1113_s5 = scalar_select %p1095_p3, %s931_s30, %s139_s25  }
  0x37   : > { %s105_s15 = scalar_select %p104_p10, %s1357_s13, %s1365_s27 }
  0x38   : > { %p156_p13 = scmp.eq.s32.totalorder %s583_s17, 5  ;;  %p1127_p4 = por %p121_p11, %p120_p9 }
  0x39   : > { %s107_s16 = sadd.s32 %s106_s21, %s105_s15  ;;  %p673_p3 = scmp.lt.s32.totalorder %s963_s12, 6 }
  0x3a   : > { %p108_p0 = scmp.lt.s32.totalorder %s107_s16, 2  ;;  %p1118_p2 = por %p156_p13, %p155_p12 }
  0x3b   : > { %s113_s20 = sadd.s32 1, %s943_s7  ;;  %p1135_p6 = pnand %p673_p3, %p1127_p4 }
  0x3c   : > { %s1335_s18 = scalar_select %p1118_p2, 1, 0 }
  0x3d   : > { %s1369_s16 = smov (!%p108_p0, %s107_s16), 2  ;;  %p594_p9 = scmp.ge.s32.totalorder %s963_s12, 1 }
  0x3e   : > { %s110_s17 = ssub.s32 %s1367_s28, %s1369_s16  ;;  %p231_p11 = scmp.lt.s32.totalorder %s963_s12, 7 }
  0x3f   : > { %p111_p5 = scmp.eq.s32.totalorder %s110_s17, 0  ;;  %s202_s28 = sand.u32 1, %s943_s7  }
  0x40   : > { %s653_s23 = scalar_select %p1127_p4, [#allocation4], [#allocation9] }
  0x41   : > { %s1142_s24 = scalar_select %p111_p5, %s943_s7, %s113_s20  }
  0x42   : > { %s654_s25 = scalar_select %p1127_p4, %s959_s11, 0 }
  0x43   : > { %1338 = sst [smem:[#allocation20_spill]] %s1142_s24  ;;  %s1371_s23 = smov (!%p673_p3, %s653_s23), [#allocation11] }
  0x44   : > { %s1373_s25 = smov (!%p673_p3, %s654_s25), 0  ;;  %p1152_p7 = pnand %p594_p9, %p231_p11 }
  0x45   : > { %s655_s26 = scalar_select %p1127_p4, [#allocation3], [#allocation10] }
  0x46   : > { %s207_s27 = sld [smem:[%s1371_s23 + %s1373_s25]]  ;;  %s590_s20 = sshll.u32 %s202_s28, 6 }
  0x47   : > { %s1375_s26 = smov (!%p673_p3, %s655_s26), [#allocation12]  ;;  %s206_s19 = scalar_lea.vmem [#allocation5], %s590_s20 }
  0x48   : > { %s213_s17 = sld [smem:[%s1375_s26 + %s1373_s25]]  ;;  %s223_s13 = sshll.u32 %s206_s19, 4  ;;  %s1158_s13 = int_to_ptr.vmem [resolvable:$true] %s223_s13 }
  0x49   : > { %s1165_s25 = scalar_lea.sflag [#allocation6], %s202_s28  ;;  %p811_p4 = pneg %p1135_p6 }
  0x4a   : > { %s814_s11 = scalar_lea.hbm %s1319_s3, 3072 }
  0x4c   : > { %s591_s15 = sadd.s32 4294967295, %s207_s27 }
  0x4d   : > { %p209_p10 = scmp.gt.s32.totalorder %s591_s15, 0 }
  0x4f   : > { %s1377_s15 = smov (!%p209_p10, %s591_s15), 0 }
  0x50   : > { %p211_p12 = scmp.lt.s32.totalorder %s955_s10, %s1377_s15 }
  0x52   : > { %s212_s14 = scalar_select %p211_p12, %s955_s10, %s1377_s15 }
  0x54   : > { %s214_s23 = sadd.s32 %s213_s17, %s212_s14 }
  0x55   : > { %p215_p13 = scmp.lt.s32.totalorder %s214_s23, 2 }
  0x57   : > { %s1379_s23 = smov (!%p215_p13, %s214_s23), 2 }
  0x58   : > { %s622_s27 = sshll.u32 %s1379_s23, 10 }
  0x59   : > { %s1163_s7 = scalar_lea.hbm %s1319_s3, %s622_s27 }
  0x5a   : > { %s809_s26 = scalar_lea.hbm %s1163_s7, 1024  ;;  %p815_p9 = scmp.lt.u32.totalorder %s1163_s7, %s1319_s3 }
  0x5b   : > { %p810_p0 = scmp.ne.s32.totalorder %s1163_s7, %s809_s26  ;;  %p816_p11 = scmp.lt.u32.totalorder %s814_s11, %s809_s26 }
  0x5c   : > { %p818_p12 = scmp.lt.u32.totalorder %s809_s26, %s1163_s7 }
  0x5d   : > { %p812_p3 = pnand %p811_p4, %p810_p0  ;;  %p817_p10 = por %p816_p11, %p815_p9 }
  0x5f   : > { %p813_p5 = pneg %p812_p3  ;;  %p819_p13 = por %p818_p12, %p817_p10 }
  0x61   : > { %p820_p2 = pnand %p819_p13, %p813_p5 }
  0x63   : > { %823 = shalt.err (!%p820_p2)
}
  0x64   : > { %s824_s28 = scalar_lea.vmem %s1158_s13, 1024  ;;  %s967_s20 = smov [#allocation5]  }
  0x65   : > { %p825_p0 = scmp.ne.s32.totalorder %s1158_s13, %s824_s28  ;;  %s829_s19 = sshll.u32 %s967_s20, 4  ;;  %s830_s19 = int_to_ptr.vmem [resolvable:$false] %s829_s19 }
  0x66   : > { %s831_s23 = scalar_lea.vmem %s830_s19, 2048  ;;  %p832_p1 = scmp.lt.s32.totalorder %s1158_s13, %s830_s19 }
  0x67   : > { %p827_p3 = pnand %p825_p0, %p811_p4  ;;  %p833_p9 = scmp.lt.s32.totalorder %s831_s23, %s824_s28 }
  0x69   : > { %p828_p8 = pneg %p827_p3  ;;  %p834_p11 = por %p833_p9, %p832_p1 }
  0x6b   : > { %p835_p10 = pnand %p834_p11, %p828_p8 }
  0x6d   : > { %838 = shalt.err (!%p835_p10)
}
  0x6e   : > { %s968_s27 = smov 64   ;;  %s969_s26 = smov 4  }
  0x6f   : > { %668 = dma.hbm_to_vmem [thread:$0]  (!%p1135_p6), %s1163_s7, 1024, %s1158_s13, %s1165_s25, %s968_s27, %s968_s27, %s969_s26  }
  0x70   : > { %235 = sbr.rel (%p1152_p7) target bundleno = 576 (0x240), region = 28  ;;  %s237_s14 = sand.u32 (!%p1152_p7), 1, %s939_s6  }
  0x71   : > { %s595_s15 = sshll.u32 (!%p1152_p7), %s237_s14, 6  ;;  %s238_s11 = scalar_lea.sflag (!%p1152_p7), [#allocation6], %s237_s14 }
  0x72   : > { %s1196_s24 = scalar_lea.vmem (!%p1152_p7), [#allocation5], %s595_s15  ;;  %p1340_p1 = scmp.ne.s32.totalorder (!%p1152_p7), %s1332_s22, 0 }
  0x77   : > { %914 = dma.done.wait (%p1340_p1), %s238_s11, 1024  }
  0x78   : > { %916 = vsyncadd (%p1340_p1), %s238_s11, 4294966272  ;;  %s272_s7 = sand.u32 1, %s927_s1   ;;  %s275_s13 = sld [smem:[#allocation4 + %s951_s9]] }
  0x79   : > { %s596_s21 = sshll.u32 %s272_s7, 4  ;;  %s281_s25 = sld [smem:[#allocation3 + %s951_s9]] }
  0x7a   : > { %s1215_s23 = scalar_lea.vmem [#allocation8], %s596_s21  ;;  %p601_p7 = scmp.ne.s32.totalorder %s947_s8, 0 }
  0x7b   : > { %v970_v0 = vmov (!%p601_p7), 0.0  }
  0x7c   : > { %315 = vst [vmem:[%s1215_s23] sm:$0xff] (!%p601_p7), %v970_v0  ;;  %316 = vst [vmem:[%s1215_s23 + $0x8] sm:$0xff] (!%p601_p7), %v970_v0 }
  0x7e   : > { %s597_s16 = sadd.s32 4294967295, %s275_s13 }
  0x7f   : > { %p277_p8 = scmp.gt.s32.totalorder %s597_s16, 0 }
  0x81   : > { %s1381_s16 = smov (!%p277_p8, %s597_s16), 0 }
  0x82   : > { %p279_p2 = scmp.lt.s32.totalorder %s947_s8, %s1381_s16 }
  0x84   : > { %s280_s17 = scalar_select %p279_p2, %s947_s8, %s1381_s16 }
  0x85   : > { %314 = sbr.rel (%p601_p7) target bundleno = 140 (0x8c), region = 36 }
  0x86   : > { %s282_s28 = sadd.s32 %s281_s25, %s280_s17 }
  0x87   : > { %p283_p6 = scmp.lt.s32.totalorder %s282_s28, 2 }
  0x89   : > { %s1383_s28 = smov (!%p283_p6, %s282_s28), 2 }
  0x8a   : > { %s1385_s28 = smov (!%p283_p6, %s1383_s28), 2 }
  0x8b   : > { %s287_s19 = scalar_lea.vmem %s1318_s2, %s1385_s28 }
  0x8c PF: > { %s317_s27 = sld [smem:[#allocation4 + %s951_s9]] }
  0x92   : > { %p602_p4 = scmp.ge.s32.totalorder %s947_s8, %s317_s27 }
  0x93   : > { %v774_v1 = vld [vmem:[%s1196_s24] sm:$0xff] (!%p602_p4)   ;;  %v971_v2 = vmov (!%p602_p4), 0.0   ;;  %v775_v3 = vld [vmem:[%s1196_s24 + $0x8] sm:$0xff] (!%p602_p4)   ;;  %vm972_vm0 = vmmov (!%p602_p4), 0   ;;  %v776_v4 = vld [vmem:[%s1196_s24 + $0x10] sm:$0xff] (!%p602_p4)   ;;  %v326_v6 = vlaneseq (!%p602_p4)  ;;  %s603_s26 = sshll.u32 (!%p602_p4), %s951_s9, 4 }
  0x94   : > { %321 = sbr.rel (%p602_p4) target bundleno = 397 (0x18d), region = 40  ;;  %633 = vmatprep.subr.bf16.mxu0 (!%p602_p4), %v971_v2  ;;  %649 = vmatprep.mubr.msk.bf16.mxu0 (!%p602_p4), %vm972_vm0, %v971_v2  ;;  %v777_v5 = vld [vmem:[%s1196_s24 + $0x18] sm:$0xff] (!%p602_p4)   ;;  %v778_v7 = vld [vmem:[%s1196_s24 + $0x20] sm:$0xff] (!%p602_p4)   ;;  %v324_v10 = vstv (!%p602_p4), %s603_s26  ;;  %v779_v11 = vld [vmem:[%s1196_s24 + $0x28] sm:$0xff] (!%p602_p4)   ;;  %v973_v18 = vmov (!%p602_p4), 1.0|1.0  }
  0x95   : > { %634 = vmatpush3.bf16.msra.mxu0 (!%p602_p4), %v774_v1  ;;  %v327_v8 = vshrl.u32 (!%p602_p4), %v326_v6, 7  ;;  %v323_v9 = vld [vmem:[%s287_s19] sm:$0x1] (!%p602_p4)  ;;  %v780_v14 = vld [vmem:[%s1196_s24 + $0x30] sm:$0xff] (!%p602_p4)  }
  0x96   : > { %635 = vmatprep.subr.bf16.mxu0 (!%p602_p4), %v971_v2  ;;  %v325_v12 = vsub.s32 (!%p602_p4), %v323_v9, %v324_v10  ;;  %v781_v17 = vld [vmem:[%s1196_s24 + $0x38] sm:$0xff] (!%p602_p4)   ;;  %v340_v19 = vld [vmem:[%s1215_s23] sm:$0xff] (!%p602_p4) }
  0x97   : > { %v331_v13 = vsub.s32 (!%p602_p4), 0, %v327_v8  ;;  %v328_v15 = vadd.s32 (!%p602_p4), 8, %v327_v8  ;;  %v341_v21 = vld [vmem:[%s1215_s23 + $0x8] sm:$0xff] (!%p602_p4) }
  0x99   : > { %636 = vmatpush3.bf16.msra.mxu0 (!%p602_p4), %v775_v3  ;;  %v332_v16 = vrot.slane (!%p602_p4), %v325_v12, %v331_v13 }
  0x9a   : > { %637 = vmatprep.subr.bf16.mxu0 (!%p602_p4), %v971_v2 }
  0x9b   : > { %vm333_vm1 = vcmp.eq.s32.totalorder %v327_v8, %v332_v16  ;;  %vm334_vm2 = vcmp.eq.s32.totalorder %v328_v15, %v332_v16 }
  0x9c   : > { %vm614_vm3 = vmpackc.low %vm334_vm2, %vm333_vm1 }
  0x9d   : > { %638 = vmatpush3.bf16.msra.mxu0 %v776_v4 }
  0x9e   : > { %639 = vmatprep.subr.bf16.mxu0 %v971_v2 }
  0xa1   : > { %640 = vmatpush3.bf16.msra.mxu0 %v777_v5 }
  0xa2   : > { %641 = vmatprep.subr.bf16.mxu0 %v971_v2 }
  0xa5   : > { %642 = vmatpush3.bf16.msra.mxu0 %v778_v7 }
  0xa6   : > { %643 = vmatprep.subr.bf16.mxu0 %v971_v2 }
  0xa9   : > { %644 = vmatpush3.bf16.msra.mxu0 %v779_v11 }
  0xaa   : > { %645 = vmatprep.subr.bf16.mxu0 %v971_v2 }
  0xad   : > { %646 = vmatpush3.bf16.msra.mxu0 %v780_v14 }
  0xae   : > { %647 = vmatprep.subr.bf16.mxu0 %v971_v2 }
  0xb1   : > { %648 = vmatpush3.bf16.msra.mxu0 %v781_v17 }
  0xb4   : > { %650 = vmatmul.mubr.msk.bf16.vlgmr.msra.gmra.mrb[0].mxu0 %vm614_vm3, %v973_v18 }
 0x187   : > { %v440_v20 = vpop.f32.mrb[0].mxu0 }
 0x188   : > { %v447_v22 = vadd.f32 %v440_v20, %v340_v19  ;;  %v651_v23 = vpop.f32.mrb[1].mxu0 }
 0x189   : > { %v443_v24 = vpop.f32.mrb[2].mxu0 }
 0x18a   : > { %449 = vst [vmem:[%s1215_s23] sm:$0xff] %v447_v22  ;;  %v448_v25 = vadd.f32 %v443_v24, %v341_v21  ;;  %v652_v26 = vpop.f32.mrb[3].mxu0 }
 0x18c   : > { %450 = vst [vmem:[%s1215_s23 + $0x8] sm:$0xff] %v448_v25 }
 0x18d PF: > { %p616_p5 = scmp.ne.s32.totalorder %s947_s8, 2 }
 0x18e   : > { %v974_v29 = vmov (!%p616_p5), 32  }
 0x18f   : > { %454 = sbr.rel (%p616_p5) target bundleno = 550 (0x226), region = 44  ;;  %782 = vset.pattern.permute.xlu0 (!%p616_p5), %v974_v29 }
 0x191   : > { %v455_v27 = vld [vmem:[%s1215_s23] sm:$0xff] (!%p616_p5) }
 0x192   : > { %v457_v30 = vadd.f32 (!%p616_p5), 1e-06, %v455_v27 }
 0x193   : > { %v456_v28 = vld [vmem:[%s1215_s23 + $0x8] sm:$0xff] (!%p616_p5) }
 0x194   : > { %461 = vperm.xlu0 (!%p616_p5), %782, %v457_v30   ;;  %v458_v31 = vadd.f32 (!%p616_p5), 1e-06, %v456_v28 }
 0x198   : > { %466 = vperm.xlu0 %782, %v458_v31  }
 0x213   : > { %v462_v32 = vpop.permute.xlu0 %461 }
 0x214   : > { %783 = vrcp.f32 %v462_v32 }
 0x217   : > { %v467_v33 = vpop.permute.xlu0 %466 }
 0x218   : > { %785 = vrcp.f32 %v467_v33 }
 0x21e   : > { %v784_v34 = vpop.eup %783 }
 0x21f   : > { %v470_v35 = vmul.f32 %v784_v34, %v455_v27 }
 0x221   : > { %473 = vst [vmem:[%s1215_s23] sm:$0xff] %v470_v35 }
 0x222   : > { %v786_v36 = vpop.eup %785 }
 0x223   : > { %v472_v37 = vmul.f32 %v786_v36, %v456_v28 }
 0x225   : > { %474 = vst [vmem:[%s1215_s23 + $0x8] sm:$0xff] %v472_v37 }
 0x226 PF: > { %s623_s8 = sshll.u32 %s951_s9, 8  ;;  %s489_s21 = sshll.u32 %s1215_s23, 4  ;;  %s1252_s21 = int_to_ptr.vmem [resolvable:$true] %s489_s21 }
 0x227   : > { %s1249_s13 = scalar_lea.hbm %s1320_s4, %s623_s8  ;;  %s1256_s16 = scalar_lea.sflag [#allocation7], %s272_s7 }
 0x228   : > { %s839_s25 = scalar_lea.vmem %s1252_s21, 256  ;;  %p1341_p13 = scmp.ne.s32.totalorder %s1334_s29, 0 }
 0x229   : > { %p840_p12 = scmp.ne.s32.totalorder %s1252_s21, %s839_s25  ;;  %s975_s9 = smov [#allocation8]  }
 0x22a   : > { %s843_s17 = sshll.u32 %s975_s9, 4  ;;  %s844_s17 = int_to_ptr.vmem [resolvable:$false] %s843_s17 }
 0x22b   : > { %p841_p0 = pnand %p840_p12, %p1341_p13  ;;  %s845_s28 = scalar_lea.vmem %s844_s17, 512 }
 0x22c   : > { %p846_p9 = scmp.lt.s32.totalorder %s1252_s21, %s844_s17  ;;  %p847_p11 = scmp.lt.s32.totalorder %s845_s28, %s839_s25 }
 0x22d   : > { %p842_p3 = pneg %p841_p0 }
 0x22e   : > { %p848_p10 = por %p847_p11, %p846_p9 }
 0x230   : > { %p849_p1 = pnand %p848_p10, %p842_p3 }
 0x232   : > { %852 = shalt.err (!%p849_p1)
}
 0x233   : > { %s853_s7 = scalar_lea.hbm %s1249_s13, 256  ;;  %s857_s19 = scalar_lea.hbm %s1320_s4, 512 }
 0x234   : > { %p854_p8 = scmp.ne.s32.totalorder %s1249_s13, %s853_s7  ;;  %p858_p7 = scmp.lt.u32.totalorder %s1249_s13, %s1320_s4 }
 0x235   : > { %p859_p4 = scmp.lt.u32.totalorder %s857_s19, %s853_s7  ;;  %p861_p12 = scmp.lt.u32.totalorder %s853_s7, %s1249_s13 }
 0x236   : > { %p855_p2 = pnand %p854_p8, %p1341_p13 }
 0x237   : > { %p860_p5 = por %p859_p4, %p858_p7 }
 0x238   : > { %p856_p6 = pneg %p855_p2 }
 0x239   : > { %p862_p0 = por %p861_p12, %p860_p5 }
 0x23b   : > { %p863_p3 = pnand %p862_p0, %p856_p6 }
 0x23d   : > { %866 = shalt.err (!%p863_p3)
}
 0x23e   : > { %s976_s26 = smov 128   ;;  %s977_s14 = smov 8  }
 0x23f   : > { %659 = dma.vmem_to_hbm [thread:$0]  (%p1341_p13), %s1252_s21, 256, %s1249_s13, %s1256_s16, %s976_s26, %s976_s26, %s977_s14  }
 0x240 PF: > { %p674_p9 = scmp.ge.s32.totalorder %s963_s12, 2  ;;  %s504_s15 = sand.u32 1, %s923_s0  }
 0x241   : > { %p1342_p11 = scmp.ne.s32.totalorder %s1335_s18, 0  ;;  %s505_s8 = scalar_lea.sflag [#allocation7], %s504_s15 }
 0x243   : > { %p670_p10 = pnand %p674_p9, %p1342_p11 }
 0x245   : > { %918 = dma.done.wait (!%p670_p10), %s505_s8, 256  }
 0x246   : > { %920 = vsyncadd (!%p670_p10), %s505_s8, 4294967040  ;;  %s28_s12 = sadd.s32 1, %s963_s12   ;;  %s1343_s29 = sld [smem:[#allocation16_spill]] }
 0x247   : > { %p25_p1 = scmp.ge.s32.totalorder %s28_s12, 8   ;;  %s1344_s7 = sld [smem:[#allocation20_spill]] }
 0x248   : > { %s1345_s9 = sld [smem:[#allocation17_spill]]  ;;  %s1346_s11 = sld [smem:[#allocation18_spill]] }
 0x249   : > { %s1347_s24 = sld [smem:[#allocation19_spill]]  ;;  %s1348_s0 = smov %s927_s1 }
 0x24a   : > { %s1349_s1 = smov %s931_s30  ;;  %s1350_s30 = smov %s1113_s5 }
 0x24b   : > { %s1351_s5 = smov %s939_s6  ;;  %s1353_s8 = smov %s955_s10 }
 0x24c   : > { %s1352_s6 = smov %s1343_s29  ;;  %27 = sbr.rel (!%p25_p1) target bundleno = 31 (0x1f), region = 88 }
 0x24e   : > { %s1354_s10 = smov %s1346_s11 }
 0x24f   : > { %s1355_s11 = smov %s1347_s24 }
 0x253   :  { %510 = vsyncpa [#allocation6], 1 }
 0x254   :  { %512 = vsyncpa [#allocation6 + $0x1], 1 }
 0x255   :  { %513 = vsyncpa [#allocation7], 1 }
 0x256   :  { %515 = vsyncpa [#allocation7 + $0x1], 1 }

</bundles_post_ra>
